<compile_context>
chip_gen: v6e
topology: v6e:2x2x1
jax: 0.10.0
libtpu: 0.0.40
codegen_flags: <defaults>
</compile_context>

<pallas_src>
import functools

import jax
import jax.numpy as jnp
from jax.experimental import pallas as pl
from jax.experimental.pallas import tpu as pltpu


def _round_up(v: int, m: int) -> int:
    return (v + m - 1) // m * m


def _triplet_block_kernel(x_ref, tcol_ref, trow_ref, sqcol_ref, valid_ref,
                          hinge_ref, correct_ref, *, margin, tm):
    i = pl.program_id(0)
    row0 = pl.multiple_of(i * tm, tm)

    xb = x_ref[pl.ds(row0, tm), :]                 # (tm, d_pad) anchor block

    # Gram block on the MXU: contract the feature dim of both operands
    # (A . A^T without materializing a transpose); f32 accumulation.
    gram = jax.lax.dot_general(
        xb, x_ref[...],
        dimension_numbers=(((1,), (1,)), ((), ())),
        preferred_element_type=jnp.float32)        # (tm, n_pad)

    xb32 = xb.astype(jnp.float32)
    sq_row = jnp.sum(xb32 * xb32, axis=1, keepdims=True)         # (tm, 1)

    # r[i, j] = ||x_j||^2 - 2 <x_i, x_j>;  dist2 = sq_row + r, with sq_row
    # added only after the row reductions below.
    r = sqcol_ref[...] - 2.0 * gram                               # (tm, n_pad)
    same = tcol_ref[...] == trow_ref[...]                         # (tm, n_pad)

    # Reductions on squared distances (clamp/sqrt are monotone); scalar fills.
    ap2 = sq_row + jnp.max(jnp.where(same, r, -jnp.inf), axis=1, keepdims=True)
    an2 = sq_row + jnp.min(jnp.where(same, jnp.inf, r), axis=1, keepdims=True)

    dist_ap = jnp.sqrt(jnp.maximum(ap2, 1e-12))                   # (tm, 1)
    dist_an = jnp.sqrt(jnp.maximum(an2, 1e-12))                   # (tm, 1)

    valid = valid_ref[...]                                        # (tm, 1) f32
    hinge = jnp.maximum(dist_ap - dist_an + jnp.float32(margin), 0.0)

    hinge_ref[0, 0] = jnp.sum(valid * hinge)
    correct_ref[0, 0] = jnp.sum(
        ((dist_an >= dist_ap) & (valid > 0.5)).astype(jnp.int32))


def triplet_loss(inputs, targets, margin=0.3):
    """Pallas implementation of TripletLoss.forward.

    Args:
      inputs:  (n, feat_dim) float features.
      targets: (n,) integer class labels.
      margin:  float margin.

    Returns:
      (loss: f32 scalar, correct: i32 scalar)
    """
    n, d = inputs.shape

    # Anchor tile: 256 matches the v6e/v7x MXU width; small batches round to
    # 8 sublanes (f32).
    if n >= 256:
        tm = 256
    elif n >= 128:
        tm = 128
    else:
        tm = _round_up(n, 8)
    n_pad = _round_up(n, tm)
    d_pad = _round_up(d, 128)        # lane-dense feature dim
    nb = n_pad // tm

    x = jnp.pad(inputs, ((0, n_pad - n), (0, d_pad - d)))
    tgt = targets.astype(jnp.int32)
    tgt_col = jnp.pad(tgt, (0, n_pad - n), constant_values=-1).reshape(n_pad, 1)
    tgt_row = tgt_col.reshape(1, n_pad)

    valid = jnp.arange(n_pad) < n
    valid_col = valid.astype(jnp.float32).reshape(n_pad, 1)

    xf = x.astype(jnp.float32)
    sq = jnp.sum(xf * xf, axis=1)
    # Padded columns get a huge squared norm so they can never be the hardest
    # negative; their -1 label keeps them out of the positive set.
    sq_col = jnp.where(valid, sq, jnp.float32(1e30)).reshape(1, n_pad)

    # Scoped-VMEM budget: resident x + per-step (tm, n_pad) f32 temporaries.
    itemsize = jnp.dtype(x.dtype).itemsize
    est = (n_pad * d_pad * itemsize          # resident feature matrix
           + 8 * tm * n_pad * 4              # gram / r / mask / select temps
           + 4 * n_pad * 4                   # label row, column norms, vectors
           + (1 << 20))
    vmem_limit = int(min(max(2 * est, 8 << 20), 64 << 20))  # 64 MiB v7x ceiling

    hinge_parts, correct_parts = pl.pallas_call(
        functools.partial(_triplet_block_kernel, margin=float(margin), tm=tm),
        out_shape=(
            jax.ShapeDtypeStruct((nb, 1), jnp.float32),
            jax.ShapeDtypeStruct((nb, 1), jnp.int32),
        ),
        grid_spec=pltpu.PrefetchScalarGridSpec(
            num_scalar_prefetch=0,
            grid=(nb,),
            in_specs=[
                pl.BlockSpec((n_pad, d_pad), lambda i: (0, 0)),   # x (resident)
                pl.BlockSpec((tm, 1), lambda i: (i, 0)),          # anchor labels
                pl.BlockSpec((1, n_pad), lambda i: (0, 0)),       # all labels
                pl.BlockSpec((1, n_pad), lambda i: (0, 0)),       # column norms
                pl.BlockSpec((tm, 1), lambda i: (i, 0)),          # anchor validity
            ],
            out_specs=(
                pl.BlockSpec((1, 1), lambda i: (i, 0),
                             memory_space=pltpu.MemorySpace.SMEM),
                pl.BlockSpec((1, 1), lambda i: (i, 0),
                             memory_space=pltpu.MemorySpace.SMEM),
            ),
        ),
        compiler_params=pltpu.CompilerParams(
            dimension_semantics=("parallel",),
            vmem_limit_bytes=vmem_limit,
        ),
    )(x, tgt_col, tgt_row, sq_col, valid_col)

    loss = jnp.sum(hinge_parts) / jnp.float32(n)   # mean over the TRUE n
    correct = jnp.sum(correct_parts)
    return loss, correct


def _reference(inputs, targets, margin=0.3):
    # Pure-JAX reference for a sanity check.
    x = inputs.astype(jnp.float32)
    sq = jnp.sum(x * x, axis=1, keepdims=True)
    dist = jnp.sqrt(jnp.maximum(sq + sq.T - 2.0 * (x @ x.T), 1e-12))
    mask = targets[:, None] == targets[None, :]
    dist_ap = jnp.max(jnp.where(mask, dist, -jnp.inf), axis=1)
    dist_an = jnp.min(jnp.where(mask, jnp.inf, dist), axis=1)
    loss = jnp.mean(jnp.maximum(dist_ap - dist_an + margin, 0.0))
    correct = jnp.sum(dist_an >= dist_ap)
    return loss, correct


if __name__ == "__main__":
    key = jax.random.PRNGKey(0)
    n, feat_dim = 8, 32
    inputs = jax.random.normal(key, (n, feat_dim), dtype=jnp.float32)
    # 4 classes, 2 samples each (every anchor has a positive and a negative).
    targets = jnp.array([0, 0, 1, 1, 2, 2, 3, 3], dtype=jnp.int32)

    loss, correct = triplet_loss(inputs, targets, margin=0.3)
    jax.block_until_ready((loss, correct))

    ref_loss, ref_correct = _reference(inputs, targets, margin=0.3)
    assert jnp.allclose(loss, ref_loss, atol=1e-5), (loss, ref_loss)
    assert int(correct) == int(ref_correct), (correct, ref_correct)

    print("KERNEL_OK")
</pallas_src>

<mosaic_0001>
module attributes {stable_mosaic.version = 11 : i64} {
  func.func @_triplet_block_kernel(%arg0: i32, %arg1: memref<8x128xf32, #tpu.memory_space<vmem>>, %arg2: memref<8x1xi32, #tpu.memory_space<vmem>>, %arg3: memref<1x8xi32, #tpu.memory_space<vmem>>, %arg4: memref<1x8xf32, #tpu.memory_space<vmem>>, %arg5: memref<8x1xf32, #tpu.memory_space<vmem>>, %arg6: memref<1x1xf32, #tpu.memory_space<smem>>, %arg7: memref<1x1xi32, #tpu.memory_space<smem>>) attributes {dimension_semantics = [#tpu.dimension_semantics<parallel>], iteration_bounds = array<i64: 1>, scalar_prefetch = 0 : i64, scratch_operands = 0 : i64, tpu.core_type = #tpu.core_type<tc>, window_params = [{pipeline_mode = #tpu.pipeline_mode<synchronous>, transform_indices = @transform_0, window_bounds = array<i64: 8, 128>}, {transform_indices = @transform_1, window_bounds = array<i64: 8, 1>}, {pipeline_mode = #tpu.pipeline_mode<synchronous>, transform_indices = @transform_2, window_bounds = array<i64: 1, 8>}, {pipeline_mode = #tpu.pipeline_mode<synchronous>, transform_indices = @transform_3, window_bounds = array<i64: 1, 8>}, {transform_indices = @transform_4, window_bounds = array<i64: 8, 1>}, {transform_indices = @transform_5, window_bounds = array<i64: 1, 1>}, {transform_indices = @transform_6, window_bounds = array<i64: 1, 1>}]} {
    %c8_i32 = arith.constant 8 : i32
    %0 = arith.muli %arg0, %c8_i32 : i32
    %1 = tpu.assume_multiple %0, 8 : i32
    %2 = arith.index_cast %1 : i32 to index
    %c0 = arith.constant 0 : index
    %3 = vector.load %arg1[%2, %c0] : memref<8x128xf32, #tpu.memory_space<vmem>>, vector<8x128xf32>
    %c0_0 = arith.constant 0 : index
    %c0_1 = arith.constant 0 : index
    %4 = vector.load %arg1[%c0_0, %c0_1] : memref<8x128xf32, #tpu.memory_space<vmem>>, vector<8x128xf32>
    %cst = arith.constant dense<0.000000e+00> : vector<8x8xf32>
    %5 = tpu.matmul %3, %4, %cst {dimension_numbers = #tpu.dot_dimension_numbers<[1], [1], [0], [0], [0, 0, 1, 0], [], []>} : vector<8x128xf32>, vector<8x128xf32>, vector<8x8xf32> -> vector<8x8xf32>
    %6 = arith.mulf %3, %3 : vector<8x128xf32>
    %cst_2 = arith.constant dense<0.000000e+00> : vector<8xf32>
    %7 = vector.multi_reduction <add>, %6, %cst_2 [1] : vector<8x128xf32> to vector<8xf32>
    %8 = vector.shape_cast %7 : vector<8xf32> to vector<8x1xf32>
    %c0_3 = arith.constant 0 : index
    %c0_4 = arith.constant 0 : index
    %9 = vector.load %arg4[%c0_3, %c0_4] : memref<1x8xf32, #tpu.memory_space<vmem>>, vector<1x8xf32>
    %cst_5 = arith.constant 2.000000e+00 : f32
    %10 = vector.broadcast %cst_5 : f32 to vector<8x8xf32>
    %11 = arith.mulf %10, %5 : vector<8x8xf32>
    %12 = vector.broadcast %9 : vector<1x8xf32> to vector<8x8xf32>
    %13 = arith.subf %12, %11 : vector<8x8xf32>
    %c0_6 = arith.constant 0 : index
    %c0_7 = arith.constant 0 : index
    %14 = vector.load %arg2[%c0_6, %c0_7] : memref<8x1xi32, #tpu.memory_space<vmem>>, vector<8x1xi32>
    %c0_8 = arith.constant 0 : index
    %c0_9 = arith.constant 0 : index
    %15 = vector.load %arg3[%c0_8, %c0_9] : memref<1x8xi32, #tpu.memory_space<vmem>>, vector<1x8xi32>
    %16 = vector.broadcast %14 : vector<8x1xi32> to vector<8x8xi32>
    %17 = vector.broadcast %15 : vector<1x8xi32> to vector<8x8xi32>
    %18 = arith.cmpi eq, %16, %17 : vector<8x8xi32>
    %cst_10 = arith.constant 0xFF800000 : f32
    %19 = vector.broadcast %cst_10 : f32 to vector<8x8xf32>
    %20 = arith.select %18, %13, %19 : vector<8x8xi1>, vector<8x8xf32>
    %cst_11 = arith.constant dense<0xFF800000> : vector<8xf32>
    %21 = vector.multi_reduction <maximumf>, %20, %cst_11 [1] : vector<8x8xf32> to vector<8xf32>
    %22 = vector.shape_cast %21 : vector<8xf32> to vector<8x1xf32>
    %23 = arith.addf %8, %22 : vector<8x1xf32>
    %cst_12 = arith.constant 0x7F800000 : f32
    %24 = vector.broadcast %cst_12 : f32 to vector<8x8xf32>
    %25 = arith.select %18, %24, %13 : vector<8x8xi1>, vector<8x8xf32>
    %cst_13 = arith.constant dense<0x7F800000> : vector<8xf32>
    %26 = vector.multi_reduction <minimumf>, %25, %cst_13 [1] : vector<8x8xf32> to vector<8xf32>
    %27 = vector.shape_cast %26 : vector<8xf32> to vector<8x1xf32>
    %28 = arith.addf %8, %27 : vector<8x1xf32>
    %cst_14 = arith.constant 9.99999996E-13 : f32
    %29 = vector.broadcast %cst_14 : f32 to vector<8x1xf32>
    %30 = arith.maximumf %23, %29 : vector<8x1xf32>
    %31 = math.sqrt %30 : vector<8x1xf32>
    %cst_15 = arith.constant 9.99999996E-13 : f32
    %32 = vector.broadcast %cst_15 : f32 to vector<8x1xf32>
    %33 = arith.maximumf %28, %32 : vector<8x1xf32>
    %34 = math.sqrt %33 : vector<8x1xf32>
    %c0_16 = arith.constant 0 : index
    %c0_17 = arith.constant 0 : index
    %35 = vector.load %arg5[%c0_16, %c0_17] : memref<8x1xf32, #tpu.memory_space<vmem>>, vector<8x1xf32>
    %36 = arith.subf %31, %34 : vector<8x1xf32>
    %cst_18 = arith.constant 3.000000e-01 : f32
    %37 = vector.broadcast %cst_18 : f32 to vector<8x1xf32>
    %38 = arith.addf %36, %37 : vector<8x1xf32>
    %cst_19 = arith.constant 0.000000e+00 : f32
    %39 = vector.broadcast %cst_19 : f32 to vector<8x1xf32>
    %40 = arith.maximumf %38, %39 : vector<8x1xf32>
    %41 = arith.mulf %35, %40 : vector<8x1xf32>
    %42 = vector.shape_cast %41 : vector<8x1xf32> to vector<1x8x1xf32>
    %cst_20 = arith.constant dense<0.000000e+00> : vector<1xf32>
    %43 = vector.multi_reduction <add>, %42, %cst_20 [1, 2] : vector<1x8x1xf32> to vector<1xf32>
    %44 = vector.shape_cast %43 : vector<1xf32> to vector<1x1x1xf32>
    %45 = vector.extract %44[0, 0, 0] : f32 from vector<1x1x1xf32>
    %c0_21 = arith.constant 0 : index
    %c0_22 = arith.constant 0 : index
    %46 = memref.load %arg6[%c0_21, %c0_22] : memref<1x1xf32, #tpu.memory_space<smem>>
    memref.store %45, %arg6[%c0_21, %c0_22] : memref<1x1xf32, #tpu.memory_space<smem>>
    %47 = arith.cmpf oge, %34, %31 : vector<8x1xf32>
    %cst_23 = arith.constant 5.000000e-01 : f32
    %48 = vector.broadcast %cst_23 : f32 to vector<8x1xf32>
    %49 = arith.cmpf ogt, %35, %48 : vector<8x1xf32>
    %50 = arith.andi %47, %49 : vector<8x1xi1>
    %51 = arith.extui %50 : vector<8x1xi1> to vector<8x1xi32>
    %52 = vector.shape_cast %51 : vector<8x1xi32> to vector<1x8x1xi32>
    %cst_24 = arith.constant dense<0> : vector<1xi32>
    %53 = vector.multi_reduction <add>, %52, %cst_24 [1, 2] : vector<1x8x1xi32> to vector<1xi32>
    %54 = vector.shape_cast %53 : vector<1xi32> to vector<1x1x1xi32>
    %55 = vector.extract %54[0, 0, 0] : i32 from vector<1x1x1xi32>
    %c0_25 = arith.constant 0 : index
    %c0_26 = arith.constant 0 : index
    %56 = memref.load %arg7[%c0_25, %c0_26] : memref<1x1xi32, #tpu.memory_space<smem>>
    memref.store %55, %arg7[%c0_25, %c0_26] : memref<1x1xi32, #tpu.memory_space<smem>>
    return
  }
  func.func @transform_0(%arg0: i32) -> (i32, i32) {
    %c0_i32 = arith.constant 0 : i32
    %c0_i32_0 = arith.constant 0 : i32
    %c0_i32_1 = arith.constant 0 : i32
    return %c0_i32, %c0_i32_0 : i32, i32
  }
  func.func @transform_1(%arg0: i32) -> (i32, i32) {
    %c0_i32 = arith.constant 0 : i32
    %c0_i32_0 = arith.constant 0 : i32
    return %arg0, %c0_i32 : i32, i32
  }
  func.func @transform_2(%arg0: i32) -> (i32, i32) {
    %c0_i32 = arith.constant 0 : i32
    %c0_i32_0 = arith.constant 0 : i32
    %c0_i32_1 = arith.constant 0 : i32
    return %c0_i32, %c0_i32_0 : i32, i32
  }
  func.func @transform_3(%arg0: i32) -> (i32, i32) {
    %c0_i32 = arith.constant 0 : i32
    %c0_i32_0 = arith.constant 0 : i32
    %c0_i32_1 = arith.constant 0 : i32
    return %c0_i32, %c0_i32_0 : i32, i32
  }
  func.func @transform_4(%arg0: i32) -> (i32, i32) {
    %c0_i32 = arith.constant 0 : i32
    %c0_i32_0 = arith.constant 0 : i32
    return %arg0, %c0_i32 : i32, i32
  }
  func.func @transform_5(%arg0: i32) -> (i32, i32) {
    %c0_i32 = arith.constant 0 : i32
    %c0_i32_0 = arith.constant 0 : i32
    return %arg0, %c0_i32 : i32, i32
  }
  func.func @transform_6(%arg0: i32) -> (i32, i32) {
    %c0_i32 = arith.constant 0 : i32
    %c0_i32_0 = arith.constant 0 : i32
    return %arg0, %c0_i32 : i32, i32
  }
}

</mosaic_0001>

<bundles_post_ra>
// kernel: tpu_custom_call.1
= control target key start
LH: loop header
LB: loop body
LE: loop exit
PB: predicated region body
PF: predicated region fallthrough
CT: control target
= control target key end

     0   :  { %12 = vsyncpa [#allocation3], 0  ;;  %v259_v2 = vmov 0.0   ;;  %vm260_vm0 = vmmov 0   ;;  %s320_s0 = inlined_call_operand.vmem [shape: f32[8,128], index: 0, kind: input, shape index: {}]   ;;  %s321_s1 = inlined_call_operand.vmem [shape: s32[8,1], index: 1, kind: input, shape index: {}]   ;;  %s322_s2 = inlined_call_operand.vmem [shape: s32[1,8], index: 2, kind: input, shape index: {}]   ;;  %s323_s3 = inlined_call_operand.vmem [shape: f32[1,8], index: 3, kind: input, shape index: {}]   ;;  %s324_s4 = inlined_call_operand.vmem [shape: f32[8,1], index: 4, kind: input, shape index: {}]   ;;  %s325_s5 = inlined_call_operand.hbm [shape: f32[1,1], index: 5, kind: output, shape index: {0}]   ;;  %s326_s6 = inlined_call_operand.hbm [shape: s32[1,1], index: 6, kind: output, shape index: {1}]  }
   0x1   :  { %v27_v0 = vld [vmem:[%s320_s0] sm:$0xff]  ;;  %220 = vmatprep.subr.mxu0 %v259_v2  ;;  %222 = vmatprep.mubr.msk.f32.mxu0 %vm260_vm0, %v259_v2 }
   0x2   :  { %v110_v1 = vld [vmem:[%s321_s1] sm:$0xff] }
   0x3   :  { %13 = vsyncpa [#allocation5], 0  ;;  %221 = vmatpush3.xpose.msra.mxu0 %v27_v0  ;;  %v261_v3 = vmov 0   ;;  %v98_v4 = vmul.f32 %v27_v0, %v27_v0  ;;  %v217_v5 = vld [vmem:[%s322_s2] ss:$0 sm:$0xff]  ;;  %vm121_vm2 = vcmask 64512  }
   0x4   :  { %234 = vset.pattern.permute.xlu0 %v261_v3  ;;  %v216_v8 = vld [vmem:[%s323_s3] ss:$0 sm:$0xff]  ;;  %vm152_vm8 = vcmask 7168   ;;  %s262_s28 = smov [#allocation2]   ;;  %s263_s7 = smov [#allocation4]  }
   0x5   :  { %113 = vperm.xlu0 %234, %v110_v1   ;;  %v147_v26 = vld [vmem:[%s324_s4] sm:$0xff] }
   0x6   :  { %223 = vmatmul.mubr.f32.vlgmr.msra.gmra.mxu0 %v27_v0  ;;  %vm166_vm7 = vcmp.gt.f32.partialorder %v147_v26, 0.5 }
  0x24   :  { %99 = vadd.xlane.f32.xlu0 %v98_v4 }
  0x80   :  { %v114_v6 = vpop.permute.xlu0 %113 }
  0x81   :  { %vm119_vm1 = vcmp.eq.s32.totalorder %v114_v6, %v217_v5 }
  0xad   :  { %v100_v16 = vpop.xlane.xlu0 %99 }
  0xc6   :  { %v94_v7 = vpop.f32.mrf.mxu0 }
  0xc7   :  { %v102_v9 = vmul.f32 2.0, %v94_v7 }
  0xc8   :  { %v224_v10 = vpop.f32.mrf.mxu0 }
  0xc9   :  { %v109_v11 = vsub.f32 %v216_v8, %v102_v9 }
  0xcb   :  { %v120_v12 = vsel %vm119_vm1, %v109_v11, -inf  ;;  %v126_v14 = vsel %vm119_vm1, inf, %v109_v11 }
  0xcc   :  { %v122_v13 = vsel %vm121_vm2, %v120_v12, -inf  ;;  %v127_v15 = vsel %vm121_vm2, %v126_v14, inf }
  0xcd   :  { %123 = vmax.xlane.f32.xlu1 %v122_v13 }
  0xd1   :  { %128 = vmin.xlane.f32.xlu1 %v127_v15 }
 0x156   :  { %v124_v17 = vpop.xlane.xlu1 %123 }
 0x157   :  { %v125_v18 = vadd.f32 %v124_v17, %v100_v16 }
 0x159   :  { %v131_v19 = vmax.f32 %v125_v18, 1e-12 }
 0x15a   :  { %v129_v20 = vpop.xlane.xlu1 %128 }
 0x15b   :  { %235 = vrsqrt.f32 %v131_v19  ;;  %v130_v21 = vadd.f32 %v129_v20, %v100_v16  ;;  %vm134_vm3 = vcmp.eq.f32.partialorder %v131_v19, inf  ;;  %v137_v29 = vand.u32 2147483648, %v131_v19 }
 0x15c   :  { %vm136_vm5 = vcmp.eq.f32.partialorder %v131_v19, 0.0 }
 0x15d   :  { %v139_v22 = vmax.f32 %v130_v21, 1e-12 }
 0x15f   :  { %237 = vrsqrt.f32 %v139_v22  ;;  %vm142_vm4 = vcmp.eq.f32.partialorder %v139_v22, inf  ;;  %v145_v30 = vand.u32 2147483648, %v139_v22  ;;  %vm144_vm6 = vcmp.eq.f32.partialorder %v139_v22, 0.0 }
 0x168   :  { %v236_v23 = vpop.eup %235 }
 0x169   :  { %v133_v24 = vmul.f32 %v236_v23, %v131_v19 }
 0x16b   :  { %v135_v27 = vsel %vm134_vm3, %v131_v19, %v133_v24 }
 0x16c   :  { %v238_v25 = vpop.eup %237  ;;  %v138_v32 = vsel %vm136_vm5, %v137_v29, %v135_v27 }
 0x16d   :  { %v141_v28 = vmul.f32 %v238_v25, %v139_v22 }
 0x16f   :  { %v143_v31 = vsel %vm142_vm4, %v139_v22, %v141_v28 }
 0x170   :  { %v146_v33 = vsel %vm144_vm6, %v145_v30, %v143_v31 }
 0x171   :  { %vm165_vm9 = vcmp.ge.f32.partialorder %v146_v33, %v138_v32  ;;  %v148_v34 = vsub.f32 %v138_v32, %v146_v33 }
 0x172   :  { %vm167_vm10 = vmand %vm165_vm9, %vm166_vm7 }
 0x173   :  { %v168_v35 = vsel %vm167_vm10, 1, %v261_v3  ;;  %v149_v37 = vadd.f32 0.3, %v148_v34 }
 0x174   :  { %v169_v36 = vsel %vm152_vm8, %v168_v35, 0 }
 0x175   :  { %v171_v38 = vshrl.u32 %v169_v36, 16  ;;  %v170_v40 = vand.u32 65535, %v169_v36  ;;  %v150_v41 = vmax.f32 %v149_v37, 0.0 }
 0x177   :  { %v173_v39 = vcvt.s32.f32 %v171_v38  ;;  %v172_v42 = vcvt.s32.f32 %v170_v40  ;;  %v151_v43 = vmul.f32 %v150_v41, %v147_v26 }
 0x179   :  { %176 = vadd.xlane.f32.xlu1 %v173_v39  ;;  %v153_v44 = vsel %vm152_vm8, %v151_v43, 0.0 }
 0x17d   :  { %174 = vadd.xlane.f32.xlu1 %v172_v42 }
 0x181   :  { %154 = vadd.xlane.f32.xlu1 %v153_v44 }
 0x202   :  { %v177_v45 = vpop.xlane.xlu1 %176 }
 0x203   :  { %v179_v46 = vcvt.f32.s32 %v177_v45 }
 0x205   :  { %v180_v48 = vshll.u32 %v179_v46, 16 }
 0x206   :  { %v175_v47 = vpop.xlane.xlu1 %174 }
 0x207   :  { %v178_v49 = vcvt.f32.s32 %v175_v47 }
 0x209   :  { %v181_v50 = vadd.s32 %v180_v48, %v178_v49 }
 0x20a   :  { %v155_v51 = vpop.xlane.xlu1 %154 }
 0x20b   :  { %v182_v52 = vrot.slane %v181_v50, 4  ;;  %v156_v53 = vrot.slane %v155_v51, 4 }
 0x20d   :  { %v183_v54 = vadd.s32 %v182_v52, %v181_v50  ;;  %v157_v55 = vadd.f32 %v156_v53, %v155_v51 }
 0x20f   :  { %v158_v56 = vrot.slane %v157_v55, 2  ;;  %v184_v57 = vrot.slane %v183_v54, 2 }
 0x211   :  { %v159_v58 = vadd.f32 %v158_v56, %v157_v55  ;;  %v185_v59 = vadd.s32 %v184_v57, %v183_v54 }
 0x213   :  { %v160_v60 = vrot.slane %v159_v58, 1  ;;  %v186_v61 = vrot.slane %v185_v59, 1 }
 0x215   :  { %v161_v62 = vadd.f32 %v160_v60, %v159_v58  ;;  %v187_v63 = vadd.s32 %v186_v61, %v185_v59 }
 0x217   :  { %225 = vpush %v161_v62 }
 0x218   :  { %227 = vpush %v187_v63 }
 0x248   :  { %s226_s4 = spop %225 }
 0x249   :  { %s228_s27 = spop %227  ;;  %164 = sst [smem:[#allocation2]] %s226_s4 }
 0x24a   :  { %190 = sst [smem:[#allocation4]] %s228_s27 }
 0x24b   :  { %198 = dma.smem_to_hbm %s262_s28, 16, %s325_s5, [#allocation3]  }
 0x24c   :  { %206 = dma.smem_to_hbm %s263_s7, 16, %s326_s6, [#allocation5]  }
 0x24d   :  { %255 = dma.done.wait [#allocation3], 16  }
 0x24e   :  { %256 = vsyncadd [#allocation3], 4294967280 }
 0x24f   :  { %257 = dma.done.wait [#allocation5], 16  }
 0x250   :  { %258 = vsyncadd [#allocation5], 4294967280 }
 0x251   :  { %213 = sfence }
 0x252   :  { %214 = vsyncpa [#allocation3], 1 }
 0x253   :  { %215 = vsyncpa [#allocation5], 1 }

</bundles_post_ra>
